<compile_context>
chip_gen: v6e
topology: v6e:2x2x1
jax: 0.10.0
libtpu: 0.0.40
codegen_flags: <defaults>
</compile_context>

<pallas_src>
import jax
import jax.numpy as jnp
import numpy as np
from jax import lax
from jax.experimental import pallas as pl
from jax.experimental.pallas import tpu as pltpu


_LANE = 128
_PAD_DIST = 1e30   # half-distance assigned to padded rows/cols; never wins a min


def _round_up(x, m):
    return (x + m - 1) // m * m


# ---------------------------------------------------------------------------
# Chamfer-distance kernel (augmented-coordinate MXU matmul + running mins)
# ---------------------------------------------------------------------------
def _chamfer_kernel(rega_ref, ptsa_ref, d1_ref, d2_ref, d1_acc):
    # rega_ref: (1, 8, n_tile)    augmented reg tile, channels-first (N lane-dense)
    # ptsa_ref: (1, 8, m_tile)    augmented point1 tile, channels-first (M lane-dense)
    # d1_ref  : (1, n_tile, 1)    0.5*dist1 block, resident across mj
    # d2_ref  : (1, 1, 1, m_tile) per-(ni, mj) 0.5*dist2 partial (min over this n-block)
    # d1_acc  : (n_tile, 128)     VMEM scratch, lane-group running min across mj
    mj = pl.program_id(2)
    last_mj = pl.num_programs(2) - 1

    ra = rega_ref[0]                        # (8, n_tile)
    pa = ptsa_ref[0]                        # (8, m_tile)
    m_tile = pa.shape[1]

    # 0.5*||r - p||^2 for the whole tile in a single MXU matmul (contract the
    # 8 augmented channels): -r.p + 0.5|r|^2 + 0.5|p|^2.
    dh = lax.dot_general(ra, pa, (((0,), (0,)), ((), ())),
                         preferred_element_type=jnp.float32)   # (n_tile, m_tile)

    # dist2 partial for this (ni, mj): min over the n axis, written lane-dense.
    # No accumulation across ni -> the ni grid axis stays parallel.
    d2_ref[0, 0, :, :] = jnp.min(dh, axis=0, keepdims=True)

    # dist1: elementwise lane-group mins (VPU only) accumulated across mj in a
    # lane-dense scratch; the cross-lane (XLU) reduce + width-1 store happen
    # once, at the last m-block.
    part = dh[:, 0:_LANE]
    for g in range(1, m_tile // _LANE):
        part = jnp.minimum(part, dh[:, g * _LANE:(g + 1) * _LANE])

    @pl.when(mj == 0)
    def _():
        d1_acc[...] = part

    @pl.when(mj != 0)
    def _():
        d1_acc[...] = jnp.minimum(d1_acc[...], part)

    @pl.when(mj == last_mj)
    def _():
        d1_ref[0, :, :] = jnp.min(d1_acc[...], axis=1, keepdims=True)


# ---------------------------------------------------------------------------
# Wrapper helpers
# ---------------------------------------------------------------------------
def _augment(reg, point1, n_pad, m_pad):
    """Build channels-first augmented operands with pad sentinels baked in."""
    f32 = jnp.float32
    B, N, _ = reg.shape
    _, M, _ = point1.shape

    # reg rows: [-r_x, -r_y, -r_z, 0.5|r|^2, 1, 0, 0, 0]
    rn = 0.5 * jnp.sum(reg * reg, axis=-1, keepdims=True)                # (B,N,1)
    ra = jnp.concatenate(
        [-reg, rn, jnp.ones((B, N, 1), f32), jnp.zeros((B, N, 3), f32)], axis=-1)
    if n_pad != N:
        pad_row = jnp.zeros((8,), f32).at[3].set(_PAD_DIST)
        ra = jnp.concatenate(
            [ra, jnp.broadcast_to(pad_row, (B, n_pad - N, 8))], axis=1)
    ra = jnp.transpose(ra, (0, 2, 1))                                    # (B,8,n_pad)

    # point1 cols: [p_x, p_y, p_z, 1, 0.5|p|^2, 0, 0, 0]
    pn = 0.5 * jnp.sum(point1 * point1, axis=-1, keepdims=True)          # (B,M,1)
    pa = jnp.concatenate(
        [point1, jnp.ones((B, M, 1), f32), pn, jnp.zeros((B, M, 3), f32)], axis=-1)
    if m_pad != M:
        pad_col = jnp.zeros((8,), f32).at[4].set(_PAD_DIST)
        pa = jnp.concatenate(
            [pa, jnp.broadcast_to(pad_col, (B, m_pad - M, 8))], axis=1)
    pa = jnp.transpose(pa, (0, 2, 1))                                    # (B,8,m_pad)
    return ra, pa


def get_loss(reg, point1, pred, target, mat_diff_loss_scale=0.001,
             n_tile=512, m_tile=2048):
    """JAX/Pallas equivalent of the PyTorch get_loss.forward."""
    del mat_diff_loss_scale                 # unused in the reference forward
    reg = reg.astype(jnp.float32)
    point1 = point1.astype(jnp.float32)
    pred = pred.astype(jnp.float32)
    target = target.astype(jnp.int32)

    B, N, _ = reg.shape
    _, M, _ = point1.shape

    # Tile / pad selection.  N and M sit on the lane axis of their blocks, so
    # tiled blocks must be 128-multiples; M is always padded to a 128-multiple
    # (the in-kernel lane-group min needs it).  Small axes collapse to one
    # full-size block.
    n_min = _round_up(N, 8)
    if n_min <= n_tile:
        n_tile_eff, n_pad = n_min, n_min
    else:
        n_tile_eff = _round_up(n_tile, _LANE)
        n_pad = _round_up(N, n_tile_eff)

    m_min = _round_up(M, _LANE)
    if m_min <= m_tile:
        m_tile_eff, m_pad = m_min, m_min
    else:
        m_tile_eff = _round_up(m_tile, _LANE)
        m_pad = _round_up(M, m_tile_eff)

    rega, ptsa = _augment(reg, point1, n_pad, m_pad)

    n_blocks = n_pad // n_tile_eff
    m_blocks = m_pad // m_tile_eff
    grid = (B, n_blocks, m_blocks)

    d1_half, d2_half_part = pl.pallas_call(
        _chamfer_kernel,
        out_shape=(jax.ShapeDtypeStruct((B, n_pad, 1), jnp.float32),
                   jax.ShapeDtypeStruct((B, n_blocks, 1, m_pad), jnp.float32)),
        grid_spec=pltpu.PrefetchScalarGridSpec(
            num_scalar_prefetch=0,
            grid=grid,
            in_specs=[
                pl.BlockSpec((1, 8, n_tile_eff), lambda b, ni, mj: (b, 0, ni)),
                pl.BlockSpec((1, 8, m_tile_eff), lambda b, ni, mj: (b, 0, mj)),
            ],
            out_specs=[
                pl.BlockSpec((1, n_tile_eff, 1), lambda b, ni, mj: (b, ni, 0)),
                pl.BlockSpec((1, 1, 1, m_tile_eff),
                             lambda b, ni, mj: (b, ni, 0, mj)),
            ],
            scratch_shapes=[pltpu.VMEM((n_tile_eff, _LANE), jnp.float32)],
        ),
        compiler_params=pltpu.CompilerParams(
            dimension_semantics=("parallel", "parallel", "arbitrary"),
            vmem_limit_bytes=48 * 1024 * 1024),   # <= 48 MiB: safe on v7x, > v5e default
    )(rega, ptsa)

    # Tiny epilogue (plain JAX): undo the 0.5 scaling, fold per-n-block dist2
    # partials, drop padded rows/cols, clamp negative round-off, reduce.
    dist1 = 2.0 * jnp.maximum(d1_half[:, :N, 0], 0.0)                 # (B, N)
    d2_half = jnp.min(d2_half_part[:, :, 0, :], axis=1)               # (B, m_pad)
    dist2 = 2.0 * jnp.maximum(d2_half[:, :M], 0.0)                    # (B, M)
    reg_loss = jnp.mean(jnp.mean(dist1, axis=1) + jnp.mean(dist2, axis=1))

    # NLL term: O(B*C) work — cheaper as plain JAX than a dedicated pallas_call.
    # TODO(synk): matches F.nll_loss only for default mean reduction, no class
    # weights / ignore_index (same as the reference forward's usage).
    picked = jnp.take_along_axis(pred, target[:, None], axis=1)[:, 0]
    nll = -jnp.mean(picked)

    return nll + reg_loss


# ---------------------------------------------------------------------------
# Pure-JAX reference (direct squared-difference form) for validation
# ---------------------------------------------------------------------------
def _reference(reg, point1, pred, target):
    picked = jnp.take_along_axis(pred, target[:, None].astype(jnp.int32),
                                 axis=1)[:, 0]
    nll = -jnp.mean(picked)
    d = jnp.sum((reg[:, :, None, :] - point1[:, None, :, :]) ** 2, axis=-1)
    dist1 = jnp.min(d, axis=2)
    dist2 = jnp.min(d, axis=1)
    reg_loss = jnp.mean(jnp.mean(dist1, axis=1) + jnp.mean(dist2, axis=1))
    return nll + reg_loss


if __name__ == "__main__":
    key = jax.random.PRNGKey(0)

    # Case 1: small, single-block path (B=2, N=8, M=16, C=4), default tiles.
    k1, k2, k3, k4, key = jax.random.split(key, 5)
    B, N, M, C = 2, 8, 16, 4
    reg = jax.random.normal(k1, (B, N, 3), dtype=jnp.float32)
    point1 = jax.random.normal(k2, (B, M, 3), dtype=jnp.float32)
    pred = jax.nn.log_softmax(
        jax.random.normal(k3, (B, C), dtype=jnp.float32), axis=-1)
    target = jax.random.randint(k4, (B,), 0, C, dtype=jnp.int32)

    total = jax.block_until_ready(get_loss(reg, point1, pred, target))
    ref = jax.block_until_ready(_reference(reg, point1, pred, target))
    assert np.allclose(np.asarray(total), np.asarray(ref),
                       atol=1e-4, rtol=1e-4), (total, ref)

    # Case 2: multi-block + padded path in both axes (2 n-blocks, 3 m-blocks).
    k1, k2, k3, k4, key = jax.random.split(key, 5)
    B, N, M, C = 2, 200, 300, 4
    reg = jax.random.normal(k1, (B, N, 3), dtype=jnp.float32)
    point1 = jax.random.normal(k2, (B, M, 3), dtype=jnp.float32)
    pred = jax.nn.log_softmax(
        jax.random.normal(k3, (B, C), dtype=jnp.float32), axis=-1)
    target = jax.random.randint(k4, (B,), 0, C, dtype=jnp.int32)

    total2 = jax.block_until_ready(
        get_loss(reg, point1, pred, target, n_tile=128, m_tile=128))
    ref2 = jax.block_until_ready(_reference(reg, point1, pred, target))
    assert np.allclose(np.asarray(total2), np.asarray(ref2),
                       atol=1e-4, rtol=1e-4), (total2, ref2)

    print("KERNEL_OK")
</pallas_src>

<mosaic_0001>
module attributes {stable_mosaic.version = 11 : i64} {
  func.func @_chamfer_kernel(%arg0: i32, %arg1: i32, %arg2: i32, %arg3: memref<1x8x8xf32, #tpu.memory_space<vmem>>, %arg4: memref<1x8x128xf32, #tpu.memory_space<vmem>>, %arg5: memref<1x8x1xf32, #tpu.memory_space<vmem>>, %arg6: memref<1x1x1x128xf32, #tpu.memory_space<vmem>>, %arg7: memref<8x128xf32, #tpu.memory_space<vmem>>) attributes {dimension_semantics = [#tpu.dimension_semantics<parallel>, #tpu.dimension_semantics<parallel>, #tpu.dimension_semantics<arbitrary>], iteration_bounds = array<i64: 2, 1, 1>, scalar_prefetch = 0 : i64, scratch_operands = 1 : i64, tpu.core_type = #tpu.core_type<tc>, window_params = [{transform_indices = @transform_0, window_bounds = array<i64: 1, 8, 8>}, {transform_indices = @transform_1, window_bounds = array<i64: 1, 8, 128>}, {transform_indices = @transform_2, window_bounds = array<i64: 1, 8, 1>}, {transform_indices = @transform_3, window_bounds = array<i64: 1, 1, 1, 128>}]} {
    %c0 = arith.constant 0 : index
    %c0_0 = arith.constant 0 : index
    %c0_1 = arith.constant 0 : index
    %0 = vector.load %arg3[%c0, %c0_0, %c0_1] : memref<1x8x8xf32, #tpu.memory_space<vmem>>, vector<1x8x8xf32>
    %1 = vector.shape_cast %0 : vector<1x8x8xf32> to vector<8x8xf32>
    %c0_2 = arith.constant 0 : index
    %c0_3 = arith.constant 0 : index
    %c0_4 = arith.constant 0 : index
    %2 = vector.load %arg4[%c0_2, %c0_3, %c0_4] : memref<1x8x128xf32, #tpu.memory_space<vmem>>, vector<1x8x128xf32>
    %3 = vector.shape_cast %2 : vector<1x8x128xf32> to vector<8x128xf32>
    %cst = arith.constant dense<0.000000e+00> : vector<8x128xf32>
    %4 = tpu.matmul %1, %3, %cst {dimension_numbers = #tpu.dot_dimension_numbers<[0], [0], [1], [1], [0, 1, 1, 1], [], []>} : vector<8x8xf32>, vector<8x128xf32>, vector<8x128xf32> -> vector<8x128xf32>
    %cst_5 = arith.constant dense<0x7F800000> : vector<128xf32>
    %5 = vector.multi_reduction <minimumf>, %4, %cst_5 [0] : vector<8x128xf32> to vector<128xf32>
    %6 = vector.shape_cast %5 : vector<128xf32> to vector<1x128xf32>
    %c0_6 = arith.constant 0 : index
    %c0_7 = arith.constant 0 : index
    %c0_8 = arith.constant 0 : index
    %c0_9 = arith.constant 0 : index
    %7 = vector.load %arg6[%c0_6, %c0_7, %c0_8, %c0_9] : memref<1x1x1x128xf32, #tpu.memory_space<vmem>>, vector<1x1x1x128xf32>
    %8 = vector.shape_cast %7 : vector<1x1x1x128xf32> to vector<1x128xf32>
    %9 = vector.shape_cast %6 : vector<1x128xf32> to vector<1x1x1x128xf32>
    tpu.vector_store %arg6[%c0_6, %c0_7, %c0_8, %c0_9], %9 {strides = array<i32>} : memref<1x1x1x128xf32, #tpu.memory_space<vmem>>, vector<1x1x1x128xf32>,
    %c0_i32 = arith.constant 0 : i32
    %10 = arith.cmpi eq, %arg2, %c0_i32 : i32
    %11 = arith.extui %10 : i1 to i32
    %c0_i32_10 = arith.constant 0 : i32
    %12 = arith.cmpi ne, %11, %c0_i32_10 : i32
    scf.if %12 {
      %c0_15 = arith.constant 0 : index
      %c0_16 = arith.constant 0 : index
      %19 = vector.load %arg7[%c0_15, %c0_16] : memref<8x128xf32, #tpu.memory_space<vmem>>, vector<8x128xf32>
      tpu.vector_store %arg7[%c0_15, %c0_16], %4 {strides = array<i32>} : memref<8x128xf32, #tpu.memory_space<vmem>>, vector<8x128xf32>,
    } else {
    }
    %c0_i32_11 = arith.constant 0 : i32
    %13 = arith.cmpi ne, %arg2, %c0_i32_11 : i32
    %14 = arith.extui %13 : i1 to i32
    %c0_i32_12 = arith.constant 0 : i32
    %15 = arith.cmpi ne, %14, %c0_i32_12 : i32
    scf.if %15 {
      %c0_15 = arith.constant 0 : index
      %c0_16 = arith.constant 0 : index
      %19 = vector.load %arg7[%c0_15, %c0_16] : memref<8x128xf32, #tpu.memory_space<vmem>>, vector<8x128xf32>
      %20 = arith.minimumf %19, %4 : vector<8x128xf32>
      %c0_17 = arith.constant 0 : index
      %c0_18 = arith.constant 0 : index
      %21 = vector.load %arg7[%c0_17, %c0_18] : memref<8x128xf32, #tpu.memory_space<vmem>>, vector<8x128xf32>
      tpu.vector_store %arg7[%c0_17, %c0_18], %20 {strides = array<i32>} : memref<8x128xf32, #tpu.memory_space<vmem>>, vector<8x128xf32>,
    } else {
    }
    %c0_i32_13 = arith.constant 0 : i32
    %16 = arith.cmpi eq, %arg2, %c0_i32_13 : i32
    %17 = arith.extui %16 : i1 to i32
    %c0_i32_14 = arith.constant 0 : i32
    %18 = arith.cmpi ne, %17, %c0_i32_14 : i32
    scf.if %18 {
      %c0_15 = arith.constant 0 : index
      %c0_16 = arith.constant 0 : index
      %19 = vector.load %arg7[%c0_15, %c0_16] : memref<8x128xf32, #tpu.memory_space<vmem>>, vector<8x128xf32>
      %cst_17 = arith.constant dense<0x7F800000> : vector<8xf32>
      %20 = vector.multi_reduction <minimumf>, %19, %cst_17 [1] : vector<8x128xf32> to vector<8xf32>
      %21 = vector.shape_cast %20 : vector<8xf32> to vector<8x1xf32>
      %c0_18 = arith.constant 0 : index
      %c0_19 = arith.constant 0 : index
      %c0_20 = arith.constant 0 : index
      %22 = vector.load %arg5[%c0_18, %c0_19, %c0_20] : memref<1x8x1xf32, #tpu.memory_space<vmem>>, vector<1x8x1xf32>
      %23 = vector.shape_cast %22 : vector<1x8x1xf32> to vector<8x1xf32>
      %24 = vector.shape_cast %21 : vector<8x1xf32> to vector<1x8x1xf32>
      tpu.vector_store %arg5[%c0_18, %c0_19, %c0_20], %24 {strides = array<i32>} : memref<1x8x1xf32, #tpu.memory_space<vmem>>, vector<1x8x1xf32>,
    } else {
    }
    return
  }
  func.func @transform_0(%arg0: i32, %arg1: i32, %arg2: i32) -> (i32, i32, i32) {
    %c0_i32 = arith.constant 0 : i32
    %c0_i32_0 = arith.constant 0 : i32
    return %arg0, %c0_i32, %arg1 : i32, i32, i32
  }
  func.func @transform_1(%arg0: i32, %arg1: i32, %arg2: i32) -> (i32, i32, i32) {
    %c0_i32 = arith.constant 0 : i32
    %c0_i32_0 = arith.constant 0 : i32
    return %arg0, %c0_i32, %arg2 : i32, i32, i32
  }
  func.func @transform_2(%arg0: i32, %arg1: i32, %arg2: i32) -> (i32, i32, i32) {
    %c0_i32 = arith.constant 0 : i32
    %c0_i32_0 = arith.constant 0 : i32
    return %arg0, %arg1, %c0_i32 : i32, i32, i32
  }
  func.func @transform_3(%arg0: i32, %arg1: i32, %arg2: i32) -> (i32, i32, i32, i32) {
    %c0_i32 = arith.constant 0 : i32
    %c0_i32_0 = arith.constant 0 : i32
    return %arg0, %arg1, %c0_i32, %arg2 : i32, i32, i32, i32
  }
}

</mosaic_0001>

<bundles_post_ra>
// kernel: tpu_custom_call.1
= control target key start
LH: loop header
LB: loop body
LE: loop exit
PB: predicated region body
PF: predicated region fallthrough
CT: control target
= control target key end

     0   :  { %9 = vsyncpa [#allocation4], 0  ;;  %s991_s0 = inlined_call_operand.hbm [shape: f32[2,8,8], index: 0, kind: input, shape index: {}]   ;;  %s992_s1 = inlined_call_operand.hbm [shape: f32[2,8,128], index: 1, kind: input, shape index: {}]   ;;  %s993_s2 = inlined_call_operand.vmem [shape: f32[2,8,1], index: 2, kind: output, shape index: {0}]   ;;  %s994_s3 = inlined_call_operand.hbm [shape: f32[2,1,1,128], index: 3, kind: output, shape index: {1}]  }
   0x1   :  { %11 = vsyncpa [#allocation4 + $0x1], 0 }
   0x2   :  { %12 = vsyncpa [#allocation7], 0 }
   0x3   :  { %14 = vsyncpa [#allocation7 + $0x1], 0 }
   0x4   :  { %15 = vsyncpa [#allocation5], 0 }
   0x5   :  { %17 = vsyncpa [#allocation5 + $0x1], 0  ;;  %s824_s12 = smov 0   ;;  %s826_s13 = smov 0  }
   0x6   :  { %s828_s14 = smov 0   ;;  %s830_s15 = smov 0  }
   0x7   :  { %s832_s16 = smov 0   ;;  %s834_s17 = smov 0  }
   0x8 LB: > { %s565_s18 = sadd.s32 4294967295, %s797_s17   ;;  %s566_s19 = sadd.s32 4294967294, %s797_s17   ;;  %s797_s17 = sphi %s834_s17, %s23_s17   ;;  %s793_s16 = sphi %s832_s16, %s1006_s16   ;;  %s789_s15 = sphi %s830_s15, %s1005_s15   ;;  %s785_s14 = sphi %s828_s14, %s1004_s14   ;;  %s781_s13 = sphi %s826_s13, %s1003_s13   ;;  %s777_s12 = sphi %s824_s12, %s1002_s12  }
   0x9   : > { %s42_s20 = sadd.s32 1, %s793_s16  ;;  %s51_s21 = sadd.s32 1, %s785_s14 }
   0xa   : > { %p44_p0 = scmp.ge.s32.totalorder %s42_s20, 2  ;;  %p58_p1 = scmp.ne.s32.totalorder %s785_s14, %s781_s13 }
   0xb   : > { %p59_p2 = scmp.eq.s32.totalorder %s797_s17, 0  ;;  %p64_p3 = scmp.ne.s32.totalorder %s781_s13, %s777_s12 }
   0xc   : > { %s1008_s20 = smov (%p44_p0, %s42_s20), 0  ;;  %p65_p5 = scmp.eq.s32.totalorder %s565_s18, 0 }
   0xd   : > { %p865_p4 = por %p59_p2, %p58_p1  ;;  %s46_s23 = ssub.s32 %s793_s16, %s1008_s20 }
   0xe   : > { %p148_p6 = scmp.eq.s32.totalorder %s565_s18, 1  ;;  %p49_p7 = scmp.eq.s32.totalorder %s46_s23, 0 }
   0xf   : > { %p871_p8 = por %p65_p5, %p64_p3  ;;  %p154_p10 = scmp.eq.s32.totalorder %s566_s19, 1 }
  0x10   : > { %p875_p9 = por %p148_p6, %p58_p1  ;;  %p605_p13 = scmp.lt.s32.totalorder %s797_s17, 2 }
  0x11   : > { %s880_s26 = scalar_select %p49_p7, %s785_s14, %s51_s21  }
  0x12   : > { %p882_p11 = por %p154_p10, %p64_p3  ;;  %s889_s28 = sand.u32 1, %s785_s14  }
  0x13   : > { %s569_s29 = sshll.u32 %s889_s28, 3  ;;  %s570_s30 = sshll.u32 %s793_s16, 7 }
  0x14   : > { %s184_s6 = scalar_lea.hbm %s991_s0, %s570_s30  ;;  %s178_s7 = scalar_lea.vmem [#allocation3], %s569_s29 }
  0x15   : > { %s186_s8 = sshll.u32 %s178_s7, 4  ;;  %p898_p0 = pnand %p605_p13, %p865_p4  ;;  %s187_s8 = int_to_ptr.vmem [resolvable:$true] %s186_s8 }
  0x16   : > { %p573_p1 = scmp.ge.s32.totalorder %s797_s17, 1  ;;  %p210_p2 = scmp.lt.s32.totalorder %s797_s17, 3 }
  0x17   : > { %s175_s10 = scalar_lea.sflag [#allocation4], %s889_s28  ;;  %p659_p3 = pneg %p898_p0 }
  0x18   : > { %s670_s11 = scalar_lea.vmem %s187_s8, 128  ;;  %s799_s18 = smov [#allocation3]  }
  0x19   : > { %p671_p5 = scmp.ne.s32.totalorder %s187_s8, %s670_s11  ;;  %s675_s19 = sshll.u32 %s799_s18, 4  ;;  %s676_s19 = int_to_ptr.vmem [resolvable:$false] %s675_s19 }
  0x1a   : > { %s677_s21 = scalar_lea.vmem %s676_s19, 256  ;;  %p678_p4 = scmp.lt.s32.totalorder %s187_s8, %s676_s19 }
  0x1b   : > { %p673_p6 = pnand %p671_p5, %p659_p3  ;;  %p679_p10 = scmp.lt.s32.totalorder %s677_s21, %s670_s11 }
  0x1d   : > { %p674_p7 = pneg %p673_p6  ;;  %p680_p13 = por %p679_p10, %p678_p4 }
  0x1f   : > { %p681_p12 = pnand %p680_p13, %p674_p7 }
  0x21   : > { %684 = shalt.err (!%p681_p12)
}
  0x22   : > { %597 = dma.hbm_to_vmem [thread:$0]  (!%p898_p0), %s184_s6, 128, %s187_s8, %s175_s10  }
  0x23   : > { %p916_p5 = pnand %p573_p1, %p210_p2  ;;  %s203_s5 = scalar_lea.hbm %s992_s1, %s570_s30 }
  0x24   : > { %s197_s7 = scalar_lea.vmem [#allocation6], %s569_s29  ;;  %s194_s18 = scalar_lea.sflag [#allocation7], %s889_s28 }
  0x25   : > { %s205_s11 = sshll.u32 %s197_s7, 4  ;;  %s800_s6 = smov [#allocation6]   ;;  %s206_s11 = int_to_ptr.vmem [resolvable:$true] %s205_s11 }
  0x26   : > { %s698_s19 = scalar_lea.vmem %s206_s11, 128  ;;  %s703_s8 = sshll.u32 %s800_s6, 4  ;;  %s704_s8 = int_to_ptr.vmem [resolvable:$false] %s703_s8 }
  0x27   : > { %p699_p12 = scmp.ne.s32.totalorder %s206_s11, %s698_s19  ;;  %s705_s10 = scalar_lea.vmem %s704_s8, 256 }
  0x28   : > { %p706_p1 = scmp.lt.s32.totalorder %s206_s11, %s704_s8  ;;  %p707_p2 = scmp.lt.s32.totalorder %s705_s10, %s698_s19 }
  0x29   : > { %p701_p6 = pnand %p699_p12, %p659_p3 }
  0x2a   : > { %p708_p4 = por %p707_p2, %p706_p1 }
  0x2b   : > { %p702_p7 = pneg %p701_p6 }
  0x2d   : > { %p709_p10 = pnand %p708_p4, %p702_p7 }
  0x2f   : > { %712 = shalt.err (!%p709_p10)
}
  0x30   : > { %600 = dma.hbm_to_vmem [thread:$0]  (!%p898_p0), %s203_s5, 128, %s206_s11, %s194_s18  }
  0x31   : > { %214 = sbr.rel (%p916_p5) target bundleno = 516 (0x204), region = 28  ;;  %s932_s28 = sand.u32 (!%p916_p5), 1, %s781_s13  }
  0x32   : > { %s574_s29 = sshll.u32 (!%p916_p5), %s932_s28, 3  ;;  %s217_s30 = scalar_lea.sflag (!%p916_p5), [#allocation4], %s932_s28 }
  0x33   : > { %s220_s21 = scalar_lea.vmem (!%p916_p5), [#allocation3], %s574_s29 }
  0x36   : > { %764 = dma.done.wait (%p871_p8), %s217_s30, 128  }
  0x37   : > { %766 = vsyncadd (%p871_p8), %s217_s30, 4294967168  ;;  %s226_s9 = scalar_lea.sflag [#allocation7], %s932_s28  ;;  %s229_s23 = scalar_lea.vmem [#allocation6], %s574_s29 }
  0x38   : > { %768 = dma.done.wait (%p871_p8), %s226_s9, 128  }
  0x39   : > { %770 = vsyncadd (%p871_p8), %s226_s9, 4294967168  ;;  %v801_v0 = vmov 0.0   ;;  %vm802_vm0 = vmmov 0   ;;  %v270_v1 = vld [vmem:[%s220_s21] sm:$0xff]  ;;  %v271_v2 = vld [vmem:[%s229_s23] sm:$0xff]  ;;  %vm304_vm1 = vcmask 64512  }
  0x3a   : > { %583 = vmatprep.subr.mxu0 %v801_v0  ;;  %585 = vmatprep.mubr.msk.f32.mxu0 %vm802_vm0, %v801_v0  ;;  %s578_s24 = sshll.u32 %s789_s15, 4  ;;  %s262_s22 = scalar_lea.vmem [#allocation8], %s932_s28 }
  0x3b   : > { %272 = vxpose.xlu0.b32.start.end [1/1] (short) (narrow) %v270_v1, 8  ;;  %584 = vmatpush3.msra.mxu0 %v271_v2  ;;  %s430_s4 = sshll.u32 %s262_s22, 4  ;;  %s428_s11 = scalar_lea.hbm %s994_s3, %s578_s24  ;;  %s431_s4 = int_to_ptr.vmem [resolvable:$true] %s430_s4 }
  0x3c   : > { %s413_s18 = scalar_lea.sflag [#allocation5], %s932_s28  ;;  %s713_s19 = scalar_lea.vmem %s431_s4, 16 }
  0x3d   : > { %p714_p8 = scmp.ne.s32.totalorder %s431_s4, %s713_s19  ;;  %s803_s6 = smov [#allocation8]  }
  0x3e   : > { %s717_s8 = sshll.u32 %s803_s6, 4  ;;  %s718_s8 = int_to_ptr.vmem [resolvable:$false] %s717_s8 }
  0x3f   : > { %p715_p0 = pnand %p714_p8, %p875_p9  ;;  %s719_s10 = scalar_lea.vmem %s718_s8, 32 }
  0x40   : > { %p720_p13 = scmp.lt.s32.totalorder %s431_s4, %s718_s8  ;;  %p721_p5 = scmp.lt.s32.totalorder %s719_s10, %s713_s19 }
  0x41   : > { %p716_p3 = pneg %p715_p0 }
  0x42   : > { %p722_p12 = por %p721_p5, %p720_p13 }
  0x44   : > { %p723_p6 = pnand %p722_p12, %p716_p3 }
  0xb7   : > { %v288_v3 = vpop.trf.xlu0 }
  0xb8   : > { %586 = vmatmul.mubr.msk.f32.vlgmr.msra.gmra.mxu0 %vm304_vm1, %v288_v3 }
 0x178   : > { %v374_v4 = vpop.f32.mrf.mxu0 }
 0x179   : > { %v378_v5 = vrot.slane %v374_v4, 4  ;;  %401 = vmin.xlane.f32.xlu0 %v374_v4 }
 0x17a   : > { %v587_v6 = vpop.f32.mrf.mxu0 }
 0x17b   : > { %v379_v7 = vmin.f32 %v374_v4, %v378_v5 }
 0x17d   : > { %v380_v8 = vrot.slane %v379_v7, 2 }
 0x17f   : > { %v381_v9 = vmin.f32 %v379_v7, %v380_v8 }
 0x181   : > { %v382_v10 = vrot.slane %v381_v9, 1 }
 0x183   : > { %v383_v11 = vmin.f32 %v381_v9, %v382_v10 }
 0x185   : > { %384 = vst [vmem:[%s262_s22] sm:$0x1] %v383_v11 }
 0x186   : > { %726 = shalt.err (!%p723_p6)
}
 0x187   : > { %s727_s29 = scalar_lea.hbm %s428_s11, 16  ;;  %s731_s21 = scalar_lea.hbm %s994_s3, 32 }
 0x188   : > { %p728_p7 = scmp.ne.s32.totalorder %s428_s11, %s727_s29  ;;  %p732_p4 = scmp.lt.s32.totalorder %s428_s11, %s994_s3 }
 0x189   : > { %p733_p10 = scmp.lt.s32.totalorder %s731_s21, %s727_s29 }
 0x18a   : > { %p729_p1 = pnand %p728_p7, %p875_p9 }
 0x18b   : > { %p734_p8 = por %p733_p10, %p732_p4 }
 0x18c   : > { %p730_p2 = pneg %p729_p1 }
 0x18e   : > { %p735_p0 = pnand %p734_p8, %p730_p2 }
 0x190   : > { %738 = shalt.err (!%p735_p0)
}
 0x191   : > { %592 = dma.vmem_to_hbm [thread:$0]  (%p875_p9), %s431_s4, 16, %s428_s11, %s413_s18   ;;  %vm403_vm2 = vcmask 7168  }
 0x192   : > { %p263_p3 = scmp.lt.s32.totalorder %s789_s15, 1 }
 0x194   : > { %s1010_s15 = smov (!%p263_p3, %s789_s15), 1 }
 0x195   : > { %s576_s24 = sshll.u32 %s1010_s15, 3 }
 0x196   : > { %s269_s7 = scalar_lea.vmem %s993_s2, %s576_s24 }
 0x202   : > { %v402_v12 = vpop.xlane.xlu0 %401 }
 0x203   : > { %404 = vst.msk [vmem:[%s269_s7] sm:$0xff] %vm403_vm2, %v402_v12 }
 0x204 PF: > { %s452_s19 = sand.u32 1, %s777_s12   ;;  %p1001_p13 = scmp.ge.s32.totalorder %s797_s17, 2 }
 0x205   : > { %s453_s25 = scalar_lea.sflag [#allocation5], %s452_s19 }
 0x206   : > { %p602_p5 = pnand %p1001_p13, %p882_p11 }
 0x208   : > { %p603_p12 = pneg %p602_p5 }
 0x20a   : > { %772 = dma.done.wait (%p603_p12), %s453_s25, 16  }
 0x20b   : > { %774 = vsyncadd (%p603_p12), %s453_s25, 4294967280  ;;  %s23_s17 = sadd.s32 1, %s797_s17   ;;  %s1002_s12 = smov %s781_s13 }
 0x20c   : > { %p20_p9 = scmp.ge.s32.totalorder %s23_s17, 4   ;;  %s1003_s13 = smov %s785_s14 }
 0x20d   : > { %s1004_s14 = smov %s880_s26  ;;  %s1005_s15 = smov %s793_s16 }
 0x20e   : > { %s1006_s16 = smov %s1008_s20  ;;  %22 = sbr.rel (!%p20_p9) target bundleno = 8 (0x8), region = 110 }
 0x213   :  { %457 = vsyncpa [#allocation4], 1 }
 0x214   :  { %459 = vsyncpa [#allocation4 + $0x1], 1 }
 0x215   :  { %460 = vsyncpa [#allocation7], 1 }
 0x216   :  { %462 = vsyncpa [#allocation7 + $0x1], 1 }
 0x217   :  { %463 = vsyncpa [#allocation5], 1 }
 0x218   :  { %465 = vsyncpa [#allocation5 + $0x1], 1 }

</bundles_post_ra>
